<compile_context>
chip_gen: v6e
topology: v6e:2x2x1
jax: 0.10.0
libtpu: 0.0.40
codegen_flags: <defaults>
</compile_context>

<pallas_src>
import functools

import jax
import jax.numpy as jnp
from jax import lax
from jax.experimental import pallas as pl
from jax.experimental.pallas import tpu as pltpu

LANE = 128
VMEM_LIMIT = 32 * 1024 * 1024


def _round_up(x, m):
    return (x + m - 1) // m * m


def _pick_tile(dim, prefs):
    for p in prefs:
        if dim % p == 0:
            return p
    return None


# ----------------------------------------------------------------------------
# Fused conv (as tiled matmul) + folded BN + optional residual + optional ReLU
# ----------------------------------------------------------------------------
def _conv_mm_kernel(p_ref, w_ref, scale_ref, shift_ref, *rest,
                    has_residual, apply_relu):
    if has_residual:
        res_ref, o_ref, acc_ref = rest
    else:
        o_ref, acc_ref = rest
    k = pl.program_id(2)

    @pl.when(k == 0)
    def _init():
        acc_ref[...] = jnp.zeros_like(acc_ref)

    # bf16 x bf16 -> f32 accumulate on the MXU.
    acc_ref[...] += jnp.dot(p_ref[...], w_ref[...],
                            preferred_element_type=jnp.float32)

    @pl.when(k == pl.num_programs(2) - 1)
    def _finalize():
        y = acc_ref[...] * scale_ref[...] + shift_ref[...]
        if has_residual:
            y = y + res_ref[...].astype(jnp.float32)
        if apply_relu:
            y = jnp.maximum(y, 0.0)
        o_ref[...] = y.astype(o_ref.dtype)


def conv_bn(x, w, scale, shift, *, stride, padding, relu, residual=None):
    """x: [N,H,W,Cin_x] NHWC bf16 (channels may carry zero lane-padding).
       w: [KH,KW,Cin,Cout] f32, Cin <= Cin_x.  Returns [N,OH,OW,Cout_p] bf16,
       where Cout_p = round_up(Cout, 128) and padded channels are exactly 0."""
    N, H, W, Cin_x = x.shape
    KH, KW, Cin_w, Cout = w.shape
    if Cin_w != Cin_x:  # align weights to zero-padded activation channels
        w = jnp.pad(w, ((0, 0), (0, 0), (0, Cin_x - Cin_w), (0, 0)))
    Cout_p = _round_up(Cout, LANE)

    OH = (H + 2 * padding - KH) // stride + 1
    OW = (W + 2 * padding - KW) // stride + 1
    M = N * OH * OW
    K = KH * KW * Cin_x
    K_p = _round_up(K, LANE)

    # im2col via XLA's fused patch extraction (no concat of strided copies).
    # Feature ordering of the patch dim is channel-major: (cin, kh, kw).
    patches = lax.conv_general_dilated_patches(
        x, (KH, KW), (stride, stride),
        [(padding, padding), (padding, padding)],
        dimension_numbers=("NHWC", "HWIO", "NHWC"))
    patches = patches.reshape(M, K)

    # Weight matrix reordered to match (cin, kh, kw); pad K and Cout lanes.
    wmat = jnp.transpose(w, (2, 0, 1, 3)).reshape(K, Cout)
    wmat = jnp.pad(wmat, ((0, K_p - K), (0, Cout_p - Cout))).astype(jnp.bfloat16)
    scale_p = jnp.pad(scale, (0, Cout_p - Cout)).reshape(1, Cout_p).astype(jnp.float32)
    shift_p = jnp.pad(shift, (0, Cout_p - Cout)).reshape(1, Cout_p).astype(jnp.float32)

    # Tile selection: multiples of 128, sized well under v7x's 64 MiB VMEM.
    tn = 256 if Cout_p % 256 == 0 else 128
    tk = _pick_tile(K_p, (512, 384, 256, 128))
    tm = _pick_tile(M, (256, 128, 64, 32, 16, 8))
    if tm is None:
        if M <= 256:
            tm, M_p = M, M          # single full-extent block
        else:
            tm, M_p = 256, _round_up(M, 256)
    else:
        M_p = M

    if K_p != K:
        patches = jnp.pad(patches, ((0, 0), (0, K_p - K)))
    if M_p != M:
        patches = jnp.pad(patches, ((0, M_p - M), (0, 0)))
    patches = patches.astype(jnp.bfloat16)

    args = [patches, wmat, scale_p, shift_p]
    in_specs = [
        pl.BlockSpec((tm, tk), lambda i, j, k: (i, k)),
        pl.BlockSpec((tk, tn), lambda i, j, k: (k, j)),
        pl.BlockSpec((1, tn), lambda i, j, k: (0, j)),
        pl.BlockSpec((1, tn), lambda i, j, k: (0, j)),
    ]
    has_res = residual is not None
    if has_res:
        assert residual.shape[-1] == Cout_p, "residual channels must match"
        res = residual.reshape(M, Cout_p)
        if M_p != M:
            res = jnp.pad(res, ((0, M_p - M), (0, 0)))
        args.append(res.astype(jnp.bfloat16))
        # Residual co-tiled with the output block (stays resident per tile).
        in_specs.append(pl.BlockSpec((tm, tn), lambda i, j, k: (i, j)))

    grid = (M_p // tm, Cout_p // tn, K_p // tk)
    kernel = functools.partial(_conv_mm_kernel,
                               has_residual=has_res, apply_relu=relu)
    out = pl.pallas_call(
        kernel,
        out_shape=jax.ShapeDtypeStruct((M_p, Cout_p), jnp.bfloat16),
        grid_spec=pltpu.PrefetchScalarGridSpec(
            num_scalar_prefetch=0,
            grid=grid,
            in_specs=in_specs,
            out_specs=pl.BlockSpec((tm, tn), lambda i, j, k: (i, j)),
            scratch_shapes=[pltpu.VMEM((tm, tn), jnp.float32)],
        ),
        compiler_params=pltpu.CompilerParams(
            dimension_semantics=("parallel", "parallel", "arbitrary"),
            vmem_limit_bytes=VMEM_LIMIT,
        ),
    )(*args)
    if M_p != M:
        out = out[:M]
    return out.reshape(N, OH, OW, Cout_p)


# ----------------------------------------------------------------------------
# MaxPool 3x3 / stride 2 / pad 1  (plain XLA per perf review: memory-bound,
# reduce_window fuses and avoids materializing a 9x window stack in HBM)
# ----------------------------------------------------------------------------
def maxpool_3x3_s2_p1(x):
    return lax.reduce_window(
        x, jnp.array(-jnp.inf, x.dtype), lax.max,
        window_dimensions=(1, 3, 3, 1), window_strides=(1, 2, 2, 1),
        padding=((0, 0), (1, 1), (1, 1), (0, 0)))


# ----------------------------------------------------------------------------
# Head: AdaptiveAvgPool2d((1,1)) + Flatten + Linear(512, num_classes)
# ----------------------------------------------------------------------------
def _head_kernel(f_ref, w_ref, b_ref, o_ref, *, inv_hw):
    f = jnp.sum(f_ref[...].astype(jnp.float32), axis=1) * inv_hw  # global avg pool
    o_ref[...] = (jnp.dot(f.astype(jnp.bfloat16), w_ref[...],
                          preferred_element_type=jnp.float32)
                  + b_ref[...]).astype(o_ref.dtype)


def head(x, fc_w, fc_b):
    N, H, W, C = x.shape
    num_classes = fc_w.shape[1]
    NC_p = _round_up(num_classes, LANE)          # lane-dense output store
    if fc_w.shape[0] != C:                       # tolerate lane-padded features
        fc_w = jnp.pad(fc_w, ((0, C - fc_w.shape[0]), (0, 0)))
    feats = x.reshape(N, H * W, C)
    w_p = jnp.pad(fc_w, ((0, 0), (0, NC_p - num_classes))).astype(jnp.bfloat16)
    b_p = jnp.pad(fc_b, (0, NC_p - num_classes)).reshape(1, NC_p).astype(jnp.float32)
    vspec = pl.BlockSpec(memory_space=pltpu.MemorySpace.VMEM)
    out = pl.pallas_call(
        functools.partial(_head_kernel, inv_hw=1.0 / float(H * W)),
        out_shape=jax.ShapeDtypeStruct((N, NC_p), jnp.float32),
        in_specs=[vspec, vspec, vspec],
        out_specs=vspec,
        compiler_params=pltpu.CompilerParams(vmem_limit_bytes=VMEM_LIMIT),
    )(feats, w_p, b_p)
    return out[:, :num_classes]


# ----------------------------------------------------------------------------
# Deterministic parameter initialization (ResNet-34 shapes; no checkpoint)
# ----------------------------------------------------------------------------
def init_resnet34_params(key, num_classes):
    keys = iter(jax.random.split(key, 512))

    def conv_w(kh, kw, cin, cout):
        fan_in = kh * kw * cin
        return (jax.random.normal(next(keys), (kh, kw, cin, cout), jnp.float32)
                * (2.0 / fan_in) ** 0.5)

    def bn_fold(c):
        k1, k2, k3 = jax.random.split(next(keys), 3)
        gamma = 1.0 + 0.1 * jax.random.normal(k1, (c,), jnp.float32)
        beta = 0.1 * jax.random.normal(k2, (c,), jnp.float32)
        mean = 0.1 * jax.random.normal(k3, (c,), jnp.float32)
        var = jnp.ones((c,), jnp.float32)
        scale = gamma / jnp.sqrt(var + 1e-5)
        shift = beta - mean * scale
        return scale, shift

    params = {"conv1": conv_w(7, 7, 3, 64), "bn1": bn_fold(64)}

    layers = []
    in_c = 64
    for out_c, num_blocks, stride in [(64, 3, 1), (128, 4, 2),
                                      (256, 6, 2), (512, 3, 2)]:
        blocks = []
        for b in range(num_blocks):
            s = stride if b == 0 else 1
            blk = {
                "stride": s,
                "conv1": conv_w(3, 3, in_c, out_c), "bn1": bn_fold(out_c),
                "conv2": conv_w(3, 3, out_c, out_c), "bn2": bn_fold(out_c),
            }
            if s != 1 or in_c != out_c:
                blk["down_conv"] = conv_w(1, 1, in_c, out_c)
                blk["down_bn"] = bn_fold(out_c)
            blocks.append(blk)
            in_c = out_c
        layers.append(blocks)
    params["layers"] = layers

    params["fc_w"] = (jax.random.normal(next(keys), (512, num_classes),
                                        jnp.float32) / jnp.sqrt(512.0))
    params["fc_b"] = 0.01 * jax.random.normal(next(keys), (num_classes,),
                                              jnp.float32)
    return params


# ----------------------------------------------------------------------------
# Forward pass (FaceRecog.forward): features (ResNet-34 minus fc) + classifier
# ----------------------------------------------------------------------------
def face_recog_forward(params, x_nchw):
    x = jnp.transpose(x_nchw, (0, 2, 3, 1)).astype(jnp.bfloat16)  # NCHW -> NHWC

    s, sh = params["bn1"]
    x = conv_bn(x, params["conv1"], s, sh, stride=2, padding=3, relu=True)
    x = maxpool_3x3_s2_p1(x)

    for blocks in params["layers"]:
        for blk in blocks:
            stride = blk["stride"]
            s1, sh1 = blk["bn1"]
            h = conv_bn(x, blk["conv1"], s1, sh1,
                        stride=stride, padding=1, relu=True)
            if "down_conv" in blk:
                ds, dsh = blk["down_bn"]
                identity = conv_bn(x, blk["down_conv"], ds, dsh,
                                   stride=stride, padding=0, relu=False)
            else:
                identity = x
            s2, sh2 = blk["bn2"]
            x = conv_bn(h, blk["conv2"], s2, sh2,
                        stride=1, padding=1, relu=True, residual=identity)

    return head(x, params["fc_w"], params["fc_b"])


if __name__ == "__main__":
    num_classes = 10
    key = jax.random.PRNGKey(0)
    pkey, xkey, ckey = jax.random.split(key, 3)

    # --- small single-conv numerical self-check against the XLA reference ---
    ck = jax.random.split(ckey, 4)
    cx = jax.random.normal(ck[0], (1, 8, 8, 16), jnp.float32)
    cw = 0.1 * jax.random.normal(ck[1], (3, 3, 16, 32), jnp.float32)
    cs = 1.0 + 0.1 * jax.random.normal(ck[2], (32,), jnp.float32)
    csh = 0.1 * jax.random.normal(ck[3], (32,), jnp.float32)
    got = conv_bn(cx.astype(jnp.bfloat16), cw, cs, csh,
                  stride=1, padding=1, relu=True)[..., :32].astype(jnp.float32)
    ref = lax.conv_general_dilated(cx, cw, (1, 1), [(1, 1), (1, 1)],
                                   dimension_numbers=("NHWC", "HWIO", "NHWC"))
    ref = jnp.maximum(ref * cs + csh, 0.0)
    assert float(jnp.max(jnp.abs(got - ref))) < 0.12, "conv_bn mismatch vs XLA"

    # --- full forward ---
    params = init_resnet34_params(pkey, num_classes)
    # Small NCHW input consistent with the module: [N=2, C=3, 32, 32]
    x = jax.random.normal(xkey, (2, 3, 32, 32), jnp.float32)

    y = face_recog_forward(params, x)
    jax.block_until_ready(y)
    assert y.shape == (2, num_classes)
    assert bool(jnp.all(jnp.isfinite(y)))
    print("KERNEL_OK")
</pallas_src>

<mosaic_0001>
module attributes {stable_mosaic.version = 11 : i64} {
  func.func @_conv_mm_kernel(%arg0: i32, %arg1: i32, %arg2: i32, %arg3: memref<64x256xbf16, #tpu.memory_space<vmem>>, %arg4: memref<256x128xbf16, #tpu.memory_space<vmem>>, %arg5: memref<1x128xf32, #tpu.memory_space<vmem>>, %arg6: memref<1x128xf32, #tpu.memory_space<vmem>>, %arg7: memref<64x128xbf16, #tpu.memory_space<vmem>>, %arg8: memref<64x128xf32, #tpu.memory_space<vmem>>) attributes {dimension_semantics = [#tpu.dimension_semantics<parallel>, #tpu.dimension_semantics<parallel>, #tpu.dimension_semantics<arbitrary>], iteration_bounds = array<i64: 1, 1, 1>, scalar_prefetch = 0 : i64, scratch_operands = 1 : i64, tpu.core_type = #tpu.core_type<tc>, window_params = [{transform_indices = @transform_0, window_bounds = array<i64: 64, 256>}, {transform_indices = @transform_1, window_bounds = array<i64: 256, 128>}, {transform_indices = @transform_2, window_bounds = array<i64: 1, 128>}, {transform_indices = @transform_3, window_bounds = array<i64: 1, 128>}, {transform_indices = @transform_4, window_bounds = array<i64: 64, 128>}]} {
    %c0_i32 = arith.constant 0 : i32
    %0 = arith.cmpi eq, %arg2, %c0_i32 : i32
    %1 = arith.extui %0 : i1 to i32
    %c0_i32_0 = arith.constant 0 : i32
    %2 = arith.cmpi ne, %1, %c0_i32_0 : i32
    scf.if %2 {
      %cst_10 = arith.constant 0.000000e+00 : f32
      %12 = vector.broadcast %cst_10 : f32 to vector<64x128xf32>
      %c0_11 = arith.constant 0 : index
      %c0_12 = arith.constant 0 : index
      %13 = vector.load %arg8[%c0_11, %c0_12] : memref<64x128xf32, #tpu.memory_space<vmem>>, vector<64x128xf32>
      tpu.vector_store %arg8[%c0_11, %c0_12], %12 {strides = array<i32>} : memref<64x128xf32, #tpu.memory_space<vmem>>, vector<64x128xf32>,
    } else {
    }
    %c0 = arith.constant 0 : index
    %c0_1 = arith.constant 0 : index
    %3 = vector.load %arg8[%c0, %c0_1] : memref<64x128xf32, #tpu.memory_space<vmem>>, vector<64x128xf32>
    %c0_2 = arith.constant 0 : index
    %c0_3 = arith.constant 0 : index
    %4 = vector.load %arg3[%c0_2, %c0_3] : memref<64x256xbf16, #tpu.memory_space<vmem>>, vector<64x256xbf16>
    %c0_4 = arith.constant 0 : index
    %c0_5 = arith.constant 0 : index
    %5 = vector.load %arg4[%c0_4, %c0_5] : memref<256x128xbf16, #tpu.memory_space<vmem>>, vector<256x128xbf16>
    %cst = arith.constant dense<0.000000e+00> : vector<64x128xf32>
    %6 = tpu.matmul %4, %5, %cst {dimension_numbers = #tpu.dot_dimension_numbers<[1], [0], [0], [1], [0, 0, 1, 1], [], []>} : vector<64x256xbf16>, vector<256x128xbf16>, vector<64x128xf32> -> vector<64x128xf32>
    %7 = arith.addf %3, %6 : vector<64x128xf32>
    %c0_6 = arith.constant 0 : index
    %c0_7 = arith.constant 0 : index
    %8 = vector.load %arg8[%c0_6, %c0_7] : memref<64x128xf32, #tpu.memory_space<vmem>>, vector<64x128xf32>
    tpu.vector_store %arg8[%c0_6, %c0_7], %7 {strides = array<i32>} : memref<64x128xf32, #tpu.memory_space<vmem>>, vector<64x128xf32>,
    %c0_i32_8 = arith.constant 0 : i32
    %9 = arith.cmpi eq, %arg2, %c0_i32_8 : i32
    %10 = arith.extui %9 : i1 to i32
    %c0_i32_9 = arith.constant 0 : i32
    %11 = arith.cmpi ne, %10, %c0_i32_9 : i32
    scf.if %11 {
      %c0_10 = arith.constant 0 : index
      %c0_11 = arith.constant 0 : index
      %12 = vector.load %arg8[%c0_10, %c0_11] : memref<64x128xf32, #tpu.memory_space<vmem>>, vector<64x128xf32>
      %c0_12 = arith.constant 0 : index
      %c0_13 = arith.constant 0 : index
      %13 = vector.load %arg5[%c0_12, %c0_13] : memref<1x128xf32, #tpu.memory_space<vmem>>, vector<1x128xf32>
      %14 = vector.broadcast %13 : vector<1x128xf32> to vector<64x128xf32>
      %15 = arith.mulf %12, %14 : vector<64x128xf32>
      %c0_14 = arith.constant 0 : index
      %c0_15 = arith.constant 0 : index
      %16 = vector.load %arg6[%c0_14, %c0_15] : memref<1x128xf32, #tpu.memory_space<vmem>>, vector<1x128xf32>
      %17 = vector.broadcast %16 : vector<1x128xf32> to vector<64x128xf32>
      %18 = arith.addf %15, %17 : vector<64x128xf32>
      %cst_16 = arith.constant 0.000000e+00 : f32
      %19 = vector.broadcast %cst_16 : f32 to vector<64x128xf32>
      %20 = arith.maximumf %18, %19 : vector<64x128xf32>
      %21 = arith.truncf %20 : vector<64x128xf32> to vector<64x128xbf16>
      %c0_17 = arith.constant 0 : index
      %c0_18 = arith.constant 0 : index
      %22 = vector.load %arg7[%c0_17, %c0_18] : memref<64x128xbf16, #tpu.memory_space<vmem>>, vector<64x128xbf16>
      tpu.vector_store %arg7[%c0_17, %c0_18], %21 {strides = array<i32>} : memref<64x128xbf16, #tpu.memory_space<vmem>>, vector<64x128xbf16>,
    } else {
    }
    return
  }
  func.func @transform_0(%arg0: i32, %arg1: i32, %arg2: i32) -> (i32, i32) {
    %c0_i32 = arith.constant 0 : i32
    return %arg0, %arg2 : i32, i32
  }
  func.func @transform_1(%arg0: i32, %arg1: i32, %arg2: i32) -> (i32, i32) {
    %c0_i32 = arith.constant 0 : i32
    return %arg2, %arg1 : i32, i32
  }
  func.func @transform_2(%arg0: i32, %arg1: i32, %arg2: i32) -> (i32, i32) {
    %c0_i32 = arith.constant 0 : i32
    %c0_i32_0 = arith.constant 0 : i32
    return %c0_i32, %arg1 : i32, i32
  }
  func.func @transform_3(%arg0: i32, %arg1: i32, %arg2: i32) -> (i32, i32) {
    %c0_i32 = arith.constant 0 : i32
    %c0_i32_0 = arith.constant 0 : i32
    return %c0_i32, %arg1 : i32, i32
  }
  func.func @transform_4(%arg0: i32, %arg1: i32, %arg2: i32) -> (i32, i32) {
    %c0_i32 = arith.constant 0 : i32
    return %arg0, %arg1 : i32, i32
  }
}

</mosaic_0001>

<bundles_post_ra>
// kernel: tpu_custom_call.1
= control target key start
LH: loop header
LB: loop body
LE: loop exit
PB: predicated region body
PF: predicated region fallthrough
CT: control target
= control target key end

     0   :  { %9 = vsyncpa [#allocation4], 0  ;;  %s706_s0 = inlined_call_operand.hbm [shape: bf16[64,256], index: 0, kind: input, shape index: {}]   ;;  %s707_s1 = inlined_call_operand.hbm [shape: bf16[256,128], index: 1, kind: input, shape index: {}]   ;;  %s708_s2 = inlined_call_operand.vmem [shape: f32[1,128], index: 2, kind: input, shape index: {}]   ;;  %s709_s3 = inlined_call_operand.vmem [shape: f32[1,128], index: 3, kind: input, shape index: {}]   ;;  %s710_s4 = inlined_call_operand.hbm [shape: bf16[64,128], index: 4, kind: output, shape index: {}]  }
   0x1   :  { %10 = vsyncpa [#allocation7], 0 }
   0x2   :  { %11 = vsyncpa [#allocation5], 0  ;;  %s653_s15 = smov [#allocation3]  }
   0x3   :  { %s17_s16 = sshll.u32 %s653_s15, 4  ;;  %s18_s16 = int_to_ptr.vmem [resolvable:$true] %s17_s16 }
   0x4   :  { %s595_s17 = scalar_lea.vmem %s18_s16, 1024  ;;  %p600_p1 = scmp.lt.s32.totalorder %s18_s16, %s18_s16 }
   0x5   :  { %p596_p0 = scmp.ne.s32.totalorder %s18_s16, %s595_s17  ;;  %p601_p2 = scmp.lt.s32.totalorder %s595_s17, %s595_s17 }
   0x7   :  { %p602_p3 = por %p601_p2, %p600_p1 }
   0x9   :  { %p603_p4 = pnand %p602_p3, %p596_p0 }
   0xb   :  { %606 = shalt.err (!%p603_p4)
}
   0xc   :  { %s654_s18 = smov 128   ;;  %s655_s19 = smov 8  }
   0xd   :  { %23 = dma.hbm_to_vmem [thread:$0]  %s706_s0, 1024, %s18_s16, [#allocation4], %s654_s18, %s654_s18, %s655_s19  }
   0xe   :  { %s656_s22 = smov [#allocation6]  }
   0xf   :  { %s29_s23 = sshll.u32 %s656_s22, 4  ;;  %s30_s23 = int_to_ptr.vmem [resolvable:$true] %s29_s23 }
  0x10   :  { %s615_s24 = scalar_lea.vmem %s30_s23, 2048  ;;  %p620_p6 = scmp.lt.s32.totalorder %s30_s23, %s30_s23 }
  0x11   :  { %p616_p5 = scmp.ne.s32.totalorder %s30_s23, %s615_s24  ;;  %p621_p7 = scmp.lt.s32.totalorder %s615_s24, %s615_s24 }
  0x13   :  { %p622_p8 = por %p621_p7, %p620_p6 }
  0x15   :  { %p623_p9 = pnand %p622_p8, %p616_p5 }
  0x17   :  { %626 = shalt.err (!%p623_p9)
}
  0x18   :  { %s657_s25 = smov 64   ;;  %s658_s26 = smov 4  }
  0x19   :  { %35 = dma.hbm_to_vmem [thread:$0]  %s707_s1, 2048, %s30_s23, [#allocation7], %s657_s25, %s657_s25, %s658_s26  }
  0x1a   :  { %647 = dma.done.wait [#allocation4], 1024  }
  0x1b   :  { %648 = vsyncadd [#allocation4], 4294966272 }
  0x1c   :  { %649 = dma.done.wait [#allocation7], 2048  }
  0x1d   :  { %650 = vsyncadd [#allocation7], 4294965248  ;;  %v559_v0 = vld [vmem:[#allocation6 + $0x78] sm:$0xff]   ;;  %v561_v2 = vld [vmem:[#allocation6 + $0x70] sm:$0xff]  }
  0x1e   :  { %v560_v1 = vld [vmem:[#allocation6 + $0x38] sm:$0xff]   ;;  %496 = vmatprep.subr.bf16.mxu0 %v559_v0  ;;  %536 = vmatprep.subr.bf16.mxu1 %v559_v0  ;;  %v562_v3 = vld [vmem:[#allocation6 + $0x30] sm:$0xff]   ;;  %v563_v4 = vld [vmem:[#allocation6 + $0x68] sm:$0xff]  }
  0x1f   :  { %497 = vmatpush3.bf16.msra.mxu0 %v560_v1  ;;  %544 = vmatpush3.bf16.msra.mxu1 %v560_v1  ;;  %v564_v5 = vld [vmem:[#allocation6 + $0x28] sm:$0xff]   ;;  %v565_v6 = vld [vmem:[#allocation6 + $0x60] sm:$0xff]   ;;  %v567_v8 = vld [vmem:[#allocation6 + $0x58] sm:$0xff]  }
  0x20   :  { %498 = vmatprep.subr.bf16.mxu0 %v561_v2  ;;  %537 = vmatprep.subr.bf16.mxu1 %v561_v2  ;;  %v566_v7 = vld [vmem:[#allocation6 + $0x20] sm:$0xff]   ;;  %v568_v9 = vld [vmem:[#allocation6 + $0x18] sm:$0xff]   ;;  %v569_v10 = vld [vmem:[#allocation6 + $0x50] sm:$0xff]  }
  0x21   :  { %v577_v11 = vld [vmem:[#allocation3 + $0x4] ss:$8 sps:$4 sm:$0xff]   ;;  %v570_v13 = vld [vmem:[#allocation6 + $0x10] sm:$0xff]   ;;  %v575_v18 = vld [vmem:[#allocation3] ss:$8 sps:$4 sm:$0xff]  }
  0x22   :  { %v580_v12 = vld [vmem:[#allocation3 + $0x24] ss:$8 sps:$4 sm:$0xff]   ;;  %275 = vmatprep.mubr.bf16.mxu0 %v577_v11  ;;  %v578_v19 = vld [vmem:[#allocation3 + $0x20] ss:$8 sps:$4 sm:$0xff]   ;;  %v581_v20 = vld [vmem:[#allocation3 + $0x14] ss:$8 sps:$4 sm:$0xff]  }
  0x23   :  { %499 = vmatpush3.bf16.msra.mxu0 %v562_v3  ;;  %545 = vmatpush3.bf16.msra.mxu1 %v562_v3  ;;  %v571_v14 = vld [vmem:[#allocation6 + $0x48] sm:$0xff]   ;;  %v573_v16 = vld [vmem:[#allocation6 + $0x40] sm:$0xff]   ;;  %v583_v21 = vld [vmem:[#allocation3 + $0x34] ss:$8 sps:$4 sm:$0xff]  }
  0x24   :  { %500 = vmatprep.subr.bf16.mxu0 %v563_v4  ;;  %538 = vmatprep.subr.bf16.mxu1 %v563_v4  ;;  %v572_v15 = vld [vmem:[#allocation6 + $0x8] sm:$0xff]   ;;  %v574_v17 = vld [vmem:[#allocation6] sm:$0xff]   ;;  %v585_v22 = vld [vmem:[#allocation3 + $0x10] ss:$8 sps:$4 sm:$0xff]  }
  0x25   :  { %291 = vmatprep.mubr.bf16.mxu1 %v580_v12  ;;  %v586_v23 = vld [vmem:[#allocation3 + $0x30] ss:$8 sps:$4 sm:$0xff]   ;;  %v455_v27 = vld [vmem:[%s708_s2] ss:$0 sm:$0xff]  ;;  %s659_s2 = smov [#allocation8]  }
  0x26   :  { %v456_v35 = vld [vmem:[%s709_s3] ss:$0 sm:$0xff]  ;;  %s418_s3 = sshll.u32 %s659_s2, 4  ;;  %s419_s3 = int_to_ptr.vmem [resolvable:$true] %s418_s3 }
  0x27   :  { %501 = vmatpush3.bf16.msra.mxu0 %v564_v5  ;;  %546 = vmatpush3.bf16.msra.mxu1 %v564_v5  ;;  %s627_s5 = scalar_lea.vmem %s419_s3, 512  ;;  %p632_p11 = scmp.lt.s32.totalorder %s419_s3, %s419_s3 }
  0x28   :  { %502 = vmatprep.subr.bf16.mxu0 %v565_v6  ;;  %539 = vmatprep.subr.bf16.mxu1 %v565_v6  ;;  %p628_p10 = scmp.ne.s32.totalorder %s419_s3, %s627_s5  ;;  %p633_p12 = scmp.lt.s32.totalorder %s627_s5, %s627_s5 }
  0x2a   :  { %p634_p13 = por %p633_p12, %p632_p11 }
  0x2b   :  { %503 = vmatpush3.bf16.msra.mxu0 %v566_v7  ;;  %547 = vmatpush3.bf16.msra.mxu1 %v566_v7 }
  0x2c   :  { %504 = vmatprep.subr.bf16.mxu0 %v567_v8  ;;  %540 = vmatprep.subr.bf16.mxu1 %v567_v8  ;;  %p635_p0 = pnand %p634_p13, %p628_p10 }
  0x2f   :  { %505 = vmatpush3.bf16.msra.mxu0 %v568_v9  ;;  %548 = vmatpush3.bf16.msra.mxu1 %v568_v9 }
  0x30   :  { %506 = vmatprep.subr.bf16.mxu0 %v569_v10  ;;  %541 = vmatprep.subr.bf16.mxu1 %v569_v10 }
  0x33   :  { %507 = vmatpush3.bf16.msra.mxu0 %v570_v13  ;;  %549 = vmatpush3.bf16.msra.mxu1 %v570_v13 }
  0x34   :  { %508 = vmatprep.subr.bf16.mxu0 %v571_v14  ;;  %542 = vmatprep.subr.bf16.mxu1 %v571_v14 }
  0x37   :  { %509 = vmatpush3.bf16.msra.mxu0 %v572_v15  ;;  %550 = vmatpush3.bf16.msra.mxu1 %v572_v15 }
  0x38   :  { %510 = vmatprep.subr.bf16.mxu0 %v573_v16  ;;  %543 = vmatprep.subr.bf16.mxu1 %v573_v16 }
  0x3b   :  { %511 = vmatpush3.bf16.msra.mxu0 %v574_v17  ;;  %551 = vmatpush3.bf16.msra.mxu1 %v574_v17 }
  0x3e   :  { %276 = vmatmul.mubr.bf16.vlgmr.msra.gmra.mxu0 %v575_v18  ;;  %292 = vmatmul.mubr.bf16.vlgmr.msra.gmra.mxu1 %v578_v19 }
  0x3f   :  { %283 = vmatprep.mubr.bf16.mxu0 %v581_v20  ;;  %299 = vmatprep.mubr.bf16.mxu1 %v583_v21 }
  0x46   :  { %284 = vmatmul.mubr.bf16.gmra.mxu0 %v585_v22  ;;  %300 = vmatmul.mubr.bf16.gmra.mxu1 %v586_v23 }
  0xfe   :  { %v512_v24 = vpop.f32.mrf.mxu0  ;;  %v524_v25 = vpop.f32.mrf.mxu1 }
 0x100   :  { %v513_v26 = vpop.f32.mrf.mxu0  ;;  %v525_v28 = vpop.f32.mrf.mxu1 }
 0x101   :  { %v514_v29 = vadd.f32 %v513_v26, %v512_v24  ;;  %v526_v30 = vadd.f32 %v525_v28, %v524_v25 }
 0x102   :  { %v515_v31 = vpop.f32.mrf.mxu0  ;;  %v527_v32 = vpop.f32.mrf.mxu1 }
 0x103   :  { %v342_v33 = vmul.f32 %v514_v29, %v455_v27  ;;  %v346_v34 = vmul.f32 %v526_v30, %v455_v27 }
 0x104   :  { %v516_v36 = vpop.f32.mrf.mxu0  ;;  %v528_v37 = vpop.f32.mrf.mxu1 }
 0x105   :  { %v517_v38 = vadd.f32 %v516_v36, %v515_v31  ;;  %v529_v39 = vadd.f32 %v528_v37, %v527_v32  ;;  %v357_v42 = vadd.f32 %v456_v35, %v342_v33  ;;  %v361_v43 = vadd.f32 %v456_v35, %v346_v34 }
 0x106   :  { %v518_v40 = vpop.f32.mrf.mxu0  ;;  %v530_v41 = vpop.f32.mrf.mxu1 }
 0x107   :  { %v343_v44 = vmul.f32 %v517_v38, %v455_v27  ;;  %v347_v45 = vmul.f32 %v529_v39, %v455_v27  ;;  %v365_v54 = vmax.f32 %v357_v42, 0.0  ;;  %v369_v55 = vmax.f32 %v361_v43, 0.0 }
 0x108   :  { %v519_v46 = vpop.f32.mrf.mxu0  ;;  %v531_v47 = vpop.f32.mrf.mxu1 }
 0x109   :  { %v358_v48 = vadd.f32 %v456_v35, %v343_v44  ;;  %v362_v49 = vadd.f32 %v456_v35, %v347_v45  ;;  %v520_v50 = vadd.f32 %v519_v46, %v518_v40  ;;  %v532_v51 = vadd.f32 %v531_v47, %v530_v41 }
 0x10a   :  { %v521_v52 = vpop.f32.mrf.mxu0  ;;  %v533_v53 = vpop.f32.mrf.mxu1 }
 0x10b   :  { %v366_v56 = vmax.f32 %v358_v48, 0.0  ;;  %v370_v57 = vmax.f32 %v362_v49, 0.0  ;;  %v344_v58 = vmul.f32 %v520_v50, %v455_v27  ;;  %v348_v59 = vmul.f32 %v532_v51, %v455_v27 }
 0x10c   :  { %v522_v60 = vpop.f32.mrf.mxu0  ;;  %v534_v61 = vpop.f32.mrf.mxu1 }
 0x10d   :  { %v476_v62 = vpack.c.bf16 %v366_v56, %v365_v54  ;;  %v486_v63 = vpack.c.bf16 %v370_v57, %v369_v55  ;;  %v523_v0 = vadd.f32 %v522_v60, %v521_v52  ;;  %v535_v1 = vadd.f32 %v534_v61, %v533_v53 }
 0x10e   :  { %v359_v2 = vadd.f32 %v456_v35, %v344_v58  ;;  %v363_v3 = vadd.f32 %v456_v35, %v348_v59 }
 0x10f   :  { %477 = vst [vmem:[#allocation8] sm:$0xff] %v476_v62   ;;  %494 = vst [vmem:[#allocation8 + $0x10] sm:$0xff] %v486_v63   ;;  %v345_v4 = vmul.f32 %v523_v0, %v455_v27  ;;  %v349_v5 = vmul.f32 %v535_v1, %v455_v27 }
 0x110   :  { %v367_v8 = vmax.f32 %v359_v2, 0.0  ;;  %v371_v9 = vmax.f32 %v363_v3, 0.0 }
 0x111   :  { %v360_v6 = vadd.f32 %v456_v35, %v345_v4  ;;  %v364_v7 = vadd.f32 %v456_v35, %v349_v5 }
 0x113   :  { %v368_v10 = vmax.f32 %v360_v6, 0.0  ;;  %v372_v11 = vmax.f32 %v364_v7, 0.0 }
 0x115   :  { %v481_v12 = vpack.c.bf16 %v368_v10, %v367_v8  ;;  %v491_v13 = vpack.c.bf16 %v372_v11, %v371_v9 }
 0x117   :  { %493 = vst [vmem:[#allocation8 + $0x8] sm:$0xff] %v481_v12   ;;  %495 = vst [vmem:[#allocation8 + $0x18] sm:$0xff] %v491_v13  }
 0x118   :  { %638 = shalt.err (!%p635_p0)
}
 0x119   :  { %424 = dma.vmem_to_hbm [thread:$0]  %s419_s3, 512, %s710_s4, [#allocation5], %s657_s25, %s657_s25, %s658_s26  }
 0x11a   :  { %651 = dma.done.wait [#allocation5], 512  }
 0x11b   :  { %652 = vsyncadd [#allocation5], 4294966784 }
 0x11c   :  { %428 = vsyncpa [#allocation4], 1 }
 0x11d   :  { %429 = vsyncpa [#allocation7], 1 }
 0x11e   :  { %430 = vsyncpa [#allocation5], 1 }

</bundles_post_ra>
